<compile_context>
chip_gen: v6e
topology: v6e:2x2x1
jax: 0.10.0
libtpu: 0.0.40
codegen_flags: <defaults>
</compile_context>

<pallas_src>
import functools

import jax
import jax.numpy as jnp
from jax.experimental import pallas as pl
from jax.experimental.pallas import tpu as pltpu


# --------------------------------------------------------------------------- #
# Small path: one batch element per grid step, whole problem fused in VMEM.
# --------------------------------------------------------------------------- #
def _small_kernel(*refs, inv_temperature: float, has_mask: bool, matmul_dtype):
    if has_mask:
        q_ref, k_ref, v_ref, mask_ref, o_ref = refs
    else:
        q_ref, k_ref, v_ref, o_ref = refs
        mask_ref = None

    mm_dtype = matmul_dtype if matmul_dtype is not None else q_ref.dtype
    q = q_ref[0].astype(mm_dtype)                          # (Lq, D)
    k = k_ref[0].astype(mm_dtype)                          # (Lk, D)
    v = v_ref[0].astype(mm_dtype)                          # (Lk, Dv)

    # scores = q @ k^T (MXU, f32 accumulation); scale the small (Lq, Lk) score
    # tile by a precomputed 1/temperature multiply instead of dividing q.
    s = jax.lax.dot_general(q, k, (((1,), (1,)), ((), ())),
                            preferred_element_type=jnp.float32)
    s = s * inv_temperature

    if has_mask:
        s = jnp.where(mask_ref[0] == 0, jnp.float32(-1e9), s)

    # Numerically stable softmax; denominator via EUP reciprocal + multiply.
    s = s - jnp.max(s, axis=-1, keepdims=True)
    p = jnp.exp(s)
    p = p * pl.reciprocal(jnp.sum(p, axis=-1, keepdims=True), approx=True)
    # TODO(synk): training-mode attention dropout (p=0.1) would need
    # pltpu.prng_seed / pltpu.prng_random_bits; eval-mode dropout is identity.

    o_ref[0] = jnp.dot(p.astype(mm_dtype), v,
                       preferred_element_type=jnp.float32).astype(o_ref.dtype)


def _small_attention(q, k, v, mask, temperature, matmul_dtype):
    B, Lq, D = q.shape
    Lk = k.shape[1]
    Dv = v.shape[-1]

    kernel = functools.partial(
        _small_kernel, inv_temperature=1.0 / float(temperature),
        has_mask=mask is not None, matmul_dtype=matmul_dtype)

    in_specs = [
        pl.BlockSpec((1, Lq, D), lambda b: (b, 0, 0)),
        pl.BlockSpec((1, Lk, D), lambda b: (b, 0, 0)),
        pl.BlockSpec((1, Lk, Dv), lambda b: (b, 0, 0)),
    ]
    args = [q, k, v]
    if mask is not None:
        in_specs.append(pl.BlockSpec((1, Lq, Lk), lambda b: (b, 0, 0)))
        args.append(mask)

    itemsize = jnp.dtype(q.dtype).itemsize
    mask_bytes = mask.size * jnp.dtype(mask.dtype).itemsize if mask is not None else 0
    cost = pl.CostEstimate(
        flops=2 * B * Lq * Lk * D + 2 * B * Lq * Lk * Dv,
        transcendentals=B * Lq * Lk,
        bytes_accessed=(q.size + k.size + v.size + B * Lq * Dv) * itemsize + mask_bytes,
    )

    return pl.pallas_call(
        kernel,
        grid=(B,),
        in_specs=in_specs,
        out_specs=pl.BlockSpec((1, Lq, Dv), lambda b: (b, 0, 0)),
        out_shape=jax.ShapeDtypeStruct((B, Lq, Dv), q.dtype),
        compiler_params=pltpu.CompilerParams(dimension_semantics=("parallel",)),
        cost_estimate=cost,
    )(*args)


# --------------------------------------------------------------------------- #
# Flash path: tiled online-softmax, grid (B, Lq/tq, Lk/tk), KV axis last.
# --------------------------------------------------------------------------- #
def _flash_kernel(*refs, inv_temperature: float, has_mask: bool, matmul_dtype):
    if has_mask:
        q_ref, k_ref, v_ref, mask_ref, o_ref, m_sc, l_sc, acc_sc = refs
    else:
        q_ref, k_ref, v_ref, o_ref, m_sc, l_sc, acc_sc = refs
        mask_ref = None

    ki = pl.program_id(2)

    @pl.when(ki == 0)
    def _init():
        m_sc[...] = jnp.full_like(m_sc, -jnp.inf)
        l_sc[...] = jnp.zeros_like(l_sc)
        acc_sc[...] = jnp.zeros_like(acc_sc)

    mm_dtype = matmul_dtype if matmul_dtype is not None else q_ref.dtype
    # Scale q (per (tq, D) block) with a single 1/temperature multiply.
    q = (q_ref[0] * inv_temperature).astype(mm_dtype)       # (tq, D)
    k = k_ref[0].astype(mm_dtype)                           # (tk, D)
    s = jax.lax.dot_general(q, k, (((1,), (1,)), ((), ())),
                            preferred_element_type=jnp.float32)   # (tq, tk)

    if has_mask:
        s = jnp.where(mask_ref[0] == 0, jnp.float32(-1e9), s)

    m_prev = m_sc[...]
    m_new = jnp.maximum(m_prev, jnp.max(s, axis=-1, keepdims=True))
    alpha = jnp.exp(m_prev - m_new)
    p = jnp.exp(s - m_new)
    l_sc[...] = alpha * l_sc[...] + jnp.sum(p, axis=-1, keepdims=True)
    acc_sc[...] = alpha * acc_sc[...] + jnp.dot(
        p.astype(mm_dtype), v_ref[0].astype(mm_dtype),
        preferred_element_type=jnp.float32)
    m_sc[...] = m_new
    # TODO(synk): training-mode attention dropout (p=0.1) omitted (eval identity).

    @pl.when(ki == pl.num_programs(2) - 1)
    def _finalize():
        # Deferred normalization: one multiply on the (tq, Dv) output block,
        # reciprocal on the EUP slot.
        o_ref[0] = (acc_sc[...] * pl.reciprocal(l_sc[...], approx=True)
                    ).astype(o_ref.dtype)


def _flash_attention(q, k, v, mask, temperature, block_q, block_k, matmul_dtype):
    B, Lq, D = q.shape
    Lk = k.shape[1]
    Dv = v.shape[-1]
    grid = (B, Lq // block_q, Lk // block_k)

    kernel = functools.partial(
        _flash_kernel, inv_temperature=1.0 / float(temperature),
        has_mask=mask is not None, matmul_dtype=matmul_dtype)

    in_specs = [
        pl.BlockSpec((1, block_q, D), lambda b, qi, ki: (b, qi, 0)),
        pl.BlockSpec((1, block_k, D), lambda b, qi, ki: (b, ki, 0)),
        pl.BlockSpec((1, block_k, Dv), lambda b, qi, ki: (b, ki, 0)),
    ]
    args = [q, k, v]
    if mask is not None:
        in_specs.append(
            pl.BlockSpec((1, block_q, block_k), lambda b, qi, ki: (b, qi, ki)))
        args.append(mask)

    itemsize = jnp.dtype(q.dtype).itemsize
    mask_bytes = mask.size * jnp.dtype(mask.dtype).itemsize if mask is not None else 0
    cost = pl.CostEstimate(
        flops=2 * B * Lq * Lk * D + 2 * B * Lq * Lk * Dv,
        transcendentals=B * Lq * Lk,
        bytes_accessed=(q.size + k.size + v.size + B * Lq * Dv) * itemsize + mask_bytes,
    )

    return pl.pallas_call(
        kernel,
        grid=grid,
        in_specs=in_specs,
        out_specs=pl.BlockSpec((1, block_q, Dv), lambda b, qi, ki: (b, qi, 0)),
        out_shape=jax.ShapeDtypeStruct((B, Lq, Dv), q.dtype),
        scratch_shapes=[
            pltpu.VMEM((block_q, 1), jnp.float32),    # running max  m
            pltpu.VMEM((block_q, 1), jnp.float32),    # running sum  l
            pltpu.VMEM((block_q, Dv), jnp.float32),   # accumulator  acc
        ],
        compiler_params=pltpu.CompilerParams(
            dimension_semantics=("parallel", "parallel", "arbitrary"),
            # Safe on every generation (v5e default scoped is only 16 MiB);
            # leaves headroom under v7x's 64 MiB physical VMEM.
            vmem_limit_bytes=32 * 1024 * 1024,
        ),
        cost_estimate=cost,
    )(*args)


# --------------------------------------------------------------------------- #
# Dispatcher + module-style wrapper.
# --------------------------------------------------------------------------- #
def _vmem_capacity_bytes():
    try:
        return int(pltpu.get_tpu_info().vmem_capacity_bytes)
    except Exception:
        return 64 * 1024 * 1024   # conservative: v7x per-core VMEM


def scaled_dot_product_attention(q, k, v, *, temperature=3.0, mask=None,
                                 matmul_dtype=None, block_q=128, block_k=128):
    """Forward pass of ScaledDotProductAttention (eval mode: dropout == identity)."""
    B, Lq, D = q.shape
    Bk, Lk, Dk = k.shape
    Bv, Lv, Dv = v.shape
    assert (B, D) == (Bk, Dk) and (B, Lk) == (Bv, Lv), "inconsistent q/k/v shapes"
    if mask is not None:
        assert mask.shape == (B, Lq, Lk), "mask must be (B, Lq, Lk)"

    flash_ok = (Lq % block_q == 0) and (Lk % block_k == 0)

    # Per-grid-step VMEM footprint of the whole-sequence (small) path, including
    # the f32 score tile and a 2x double-buffering factor, checked against the
    # current generation's VMEM (v7x has half of v5e/v6e).
    itemsize = jnp.dtype(q.dtype).itemsize
    per_batch = ((Lq * D + Lk * D + Lk * Dv + Lq * Dv) * itemsize
                 + Lq * Lk * 4
                 + (Lq * Lk * jnp.dtype(mask.dtype).itemsize if mask is not None else 0))
    small_ok = 2 * per_batch <= _vmem_capacity_bytes() // 4

    if flash_ok and (Lq > block_q or Lk > block_k or not small_ok):
        return _flash_attention(q, k, v, mask, temperature, block_q, block_k,
                                matmul_dtype)
    if not small_ok:
        # TODO(synk): pad Lq/Lk to tile multiples and route through the flash path.
        raise ValueError("sequence too large for the whole-sequence VMEM path "
                         "and not divisible by the flash tile sizes")
    return _small_attention(q, k, v, mask, temperature, matmul_dtype)


def sdpa_module_forward(qkv, mask=None, *, temperature=3.0, matmul_dtype=None):
    """Mirrors the PyTorch module signature: qkv stacked along dim 0."""
    return scaled_dot_product_attention(qkv[0], qkv[1], qkv[2],
                                        temperature=temperature, mask=mask,
                                        matmul_dtype=matmul_dtype)


def _reference_sdpa(q, k, v, temperature, mask=None):
    """Pure-JAX reference of the PyTorch forward (eval mode)."""
    attn = jnp.matmul(q / temperature, jnp.swapaxes(k, 1, 2),
                      precision=jax.lax.Precision.HIGHEST)
    if mask is not None:
        attn = jnp.where(mask == 0, -1e9, attn)
    attn = jax.nn.softmax(attn, axis=-1)
    return jnp.matmul(attn, v, precision=jax.lax.Precision.HIGHEST)


if __name__ == "__main__":
    temperature = 3.0
    key = jax.random.PRNGKey(0)
    kq, kk, kv, km, kq2, kk2, kv2 = jax.random.split(key, 7)

    # ---------------- small path (grid over batch, whole problem in VMEM) ----
    B, L, D = 2, 16, 128
    q = jax.random.normal(kq, (B, L, D), dtype=jnp.float32)
    k = jax.random.normal(kk, (B, L, D), dtype=jnp.float32)
    v = jax.random.normal(kv, (B, L, D), dtype=jnp.float32)
    qkv = jnp.stack([q, k, v], axis=0)     # matches the PyTorch call convention

    out = jax.block_until_ready(sdpa_module_forward(qkv, temperature=temperature))
    ref = _reference_sdpa(q, k, v, temperature)
    assert out.shape == (B, L, D)
    assert jnp.allclose(out, ref, atol=2e-2, rtol=2e-2), "mismatch (small, no mask)"

    mask = (jax.random.uniform(km, (B, L, L)) > 0.3).astype(jnp.int8)
    mask = mask.at[:, :, 0].set(1)          # keep >=1 key visible per query row
    out_m = jax.block_until_ready(
        sdpa_module_forward(qkv, mask=mask, temperature=temperature))
    ref_m = _reference_sdpa(q, k, v, temperature, mask)
    assert jnp.allclose(out_m, ref_m, atol=2e-2, rtol=2e-2), "mismatch (small, mask)"

    # ---------------- flash tiled path (bf16 MXU operands, f32 accumulation) --
    B2, L2, D2 = 2, 256, 128                # 2 KV steps per q block (tq=tk=128)
    q2 = jax.random.normal(kq2, (B2, L2, D2), dtype=jnp.float32)
    k2 = jax.random.normal(kk2, (B2, L2, D2), dtype=jnp.float32)
    v2 = jax.random.normal(kv2, (B2, L2, D2), dtype=jnp.float32)

    out2 = jax.block_until_ready(scaled_dot_product_attention(
        q2, k2, v2, temperature=temperature, matmul_dtype=jnp.bfloat16))
    ref2 = _reference_sdpa(q2, k2, v2, temperature)
    assert out2.shape == (B2, L2, D2)
    assert jnp.allclose(out2, ref2, atol=5e-2, rtol=5e-2), "mismatch (flash, no mask)"

    # causal mask, int8 (4x less HBM traffic than int32)
    rows = jnp.arange(L2)[:, None]
    cols = jnp.arange(L2)[None, :]
    mask2 = jnp.broadcast_to((rows >= cols).astype(jnp.int8), (B2, L2, L2))
    out2_m = jax.block_until_ready(scaled_dot_product_attention(
        q2, k2, v2, temperature=temperature, mask=mask2, matmul_dtype=jnp.bfloat16))
    ref2_m = _reference_sdpa(q2, k2, v2, temperature, mask2)
    assert jnp.allclose(out2_m, ref2_m, atol=5e-2, rtol=5e-2), "mismatch (flash, mask)"

    print("KERNEL_OK")
</pallas_src>

<mosaic_0001>
module attributes {stable_mosaic.version = 11 : i64} {
  func.func @_small_kernel(%arg0: i32, %arg1: memref<1x16x128xf32, #tpu.memory_space<vmem>>, %arg2: memref<1x16x128xf32, #tpu.memory_space<vmem>>, %arg3: memref<1x16x128xf32, #tpu.memory_space<vmem>>, %arg4: memref<1x16x128xf32, #tpu.memory_space<vmem>>) attributes {dimension_semantics = [#tpu.dimension_semantics<parallel>], iteration_bounds = array<i64: 2>, scalar_prefetch = 0 : i64, scratch_operands = 0 : i64, tpu.core_type = #tpu.core_type<tc>, window_params = [{transform_indices = @transform_0, window_bounds = array<i64: 1, 16, 128>}, {transform_indices = @transform_1, window_bounds = array<i64: 1, 16, 128>}, {transform_indices = @transform_2, window_bounds = array<i64: 1, 16, 128>}, {transform_indices = @transform_3, window_bounds = array<i64: 1, 16, 128>}]} {
    %c0 = arith.constant 0 : index
    %c0_0 = arith.constant 0 : index
    %c0_1 = arith.constant 0 : index
    %0 = vector.load %arg1[%c0, %c0_0, %c0_1] : memref<1x16x128xf32, #tpu.memory_space<vmem>>, vector<1x16x128xf32>
    %1 = vector.shape_cast %0 : vector<1x16x128xf32> to vector<16x128xf32>
    %c0_2 = arith.constant 0 : index
    %c0_3 = arith.constant 0 : index
    %c0_4 = arith.constant 0 : index
    %2 = vector.load %arg2[%c0_2, %c0_3, %c0_4] : memref<1x16x128xf32, #tpu.memory_space<vmem>>, vector<1x16x128xf32>
    %3 = vector.shape_cast %2 : vector<1x16x128xf32> to vector<16x128xf32>
    %c0_5 = arith.constant 0 : index
    %c0_6 = arith.constant 0 : index
    %c0_7 = arith.constant 0 : index
    %4 = vector.load %arg3[%c0_5, %c0_6, %c0_7] : memref<1x16x128xf32, #tpu.memory_space<vmem>>, vector<1x16x128xf32>
    %5 = vector.shape_cast %4 : vector<1x16x128xf32> to vector<16x128xf32>
    %cst = arith.constant dense<0.000000e+00> : vector<16x16xf32>
    %6 = tpu.matmul %1, %3, %cst {dimension_numbers = #tpu.dot_dimension_numbers<[1], [1], [0], [0], [0, 0, 1, 0], [], []>} : vector<16x128xf32>, vector<16x128xf32>, vector<16x16xf32> -> vector<16x16xf32>
    %cst_8 = arith.constant 0.333333343 : f32
    %7 = vector.broadcast %cst_8 : f32 to vector<16x16xf32>
    %8 = arith.mulf %6, %7 : vector<16x16xf32>
    %cst_9 = arith.constant dense<0xFF800000> : vector<16xf32>
    %9 = vector.multi_reduction <maximumf>, %8, %cst_9 [1] : vector<16x16xf32> to vector<16xf32>
    %10 = vector.shape_cast %9 : vector<16xf32> to vector<16x1xf32>
    %11 = vector.broadcast %10 : vector<16x1xf32> to vector<16x16xf32>
    %12 = arith.subf %8, %11 : vector<16x16xf32>
    %13 = math.exp %12 : vector<16x16xf32>
    %cst_10 = arith.constant dense<0.000000e+00> : vector<16xf32>
    %14 = vector.multi_reduction <add>, %13, %cst_10 [1] : vector<16x16xf32> to vector<16xf32>
    %15 = vector.shape_cast %14 : vector<16xf32> to vector<16x1xf32>
    %16 = tpu.reciprocal %15 {approx = true} : vector<16x1xf32> -> vector<16x1xf32>
    %17 = vector.broadcast %16 : vector<16x1xf32> to vector<16x16xf32>
    %18 = arith.mulf %13, %17 : vector<16x16xf32>
    %cst_11 = arith.constant dense<0.000000e+00> : vector<16x128xf32>
    %19 = tpu.matmul %18, %5, %cst_11 {dimension_numbers = #tpu.dot_dimension_numbers<[1], [0], [0], [1], [0, 0, 1, 1], [], []>} : vector<16x16xf32>, vector<16x128xf32>, vector<16x128xf32> -> vector<16x128xf32>
    %c0_12 = arith.constant 0 : index
    %c0_13 = arith.constant 0 : index
    %c0_14 = arith.constant 0 : index
    %20 = vector.load %arg4[%c0_12, %c0_13, %c0_14] : memref<1x16x128xf32, #tpu.memory_space<vmem>>, vector<1x16x128xf32>
    %21 = vector.shape_cast %20 : vector<1x16x128xf32> to vector<16x128xf32>
    %22 = vector.shape_cast %19 : vector<16x128xf32> to vector<1x16x128xf32>
    tpu.vector_store %arg4[%c0_12, %c0_13, %c0_14], %22 {strides = array<i32>} : memref<1x16x128xf32, #tpu.memory_space<vmem>>, vector<1x16x128xf32>,
    return
  }
  func.func @transform_0(%arg0: i32) -> (i32, i32, i32) {
    %c0_i32 = arith.constant 0 : i32
    %c0_i32_0 = arith.constant 0 : i32
    %c0_i32_1 = arith.constant 0 : i32
    return %arg0, %c0_i32, %c0_i32_0 : i32, i32, i32
  }
  func.func @transform_1(%arg0: i32) -> (i32, i32, i32) {
    %c0_i32 = arith.constant 0 : i32
    %c0_i32_0 = arith.constant 0 : i32
    %c0_i32_1 = arith.constant 0 : i32
    return %arg0, %c0_i32, %c0_i32_0 : i32, i32, i32
  }
  func.func @transform_2(%arg0: i32) -> (i32, i32, i32) {
    %c0_i32 = arith.constant 0 : i32
    %c0_i32_0 = arith.constant 0 : i32
    %c0_i32_1 = arith.constant 0 : i32
    return %arg0, %c0_i32, %c0_i32_0 : i32, i32, i32
  }
  func.func @transform_3(%arg0: i32) -> (i32, i32, i32) {
    %c0_i32 = arith.constant 0 : i32
    %c0_i32_0 = arith.constant 0 : i32
    %c0_i32_1 = arith.constant 0 : i32
    return %arg0, %c0_i32, %c0_i32_0 : i32, i32, i32
  }
}

</mosaic_0001>

<bundles_post_ra>
// kernel: tpu_custom_call.1
= control target key start
LH: loop header
LB: loop body
LE: loop exit
PB: predicated region body
PF: predicated region fallthrough
CT: control target
= control target key end

     0   :  { %s1139_s0 = inlined_call_operand.hbm [shape: f32[2,16,128], index: 0, kind: input, shape index: {}]   ;;  %s1140_s1 = inlined_call_operand.hbm [shape: f32[2,16,128], index: 1, kind: input, shape index: {}]   ;;  %s1141_s2 = inlined_call_operand.hbm [shape: f32[2,16,128], index: 2, kind: input, shape index: {}]   ;;  %s1142_s3 = inlined_call_operand.hbm [shape: f32[2,16,128], index: 3, kind: output, shape index: {}]  }
   0x1   :  { %1149 = sst [smem:[#allocation12_spill]] %s1139_s0 }
   0x2   :  { %1150 = sst [smem:[#allocation13_spill]] %s1140_s1 }
   0x3   :  { %8 = vsyncpa [#allocation3], 0 }
   0x4   :  { %10 = vsyncpa [#allocation3 + $0x1], 0 }
   0x5   :  { %11 = vsyncpa [#allocation6], 0 }
   0x6   :  { %13 = vsyncpa [#allocation6 + $0x1], 0 }
   0x7   :  { %14 = vsyncpa [#allocation4], 0 }
   0x8   :  { %16 = vsyncpa [#allocation4 + $0x1], 0  ;;  %s885_s12 = smov 0   ;;  %s887_s13 = smov 0  }
   0x9   :  { %s889_s14 = smov 0   ;;  %s891_s15 = smov 0  }
   0xa LB: > { %s906_s16 = sadd.s32 4294967295, %s855_s15   ;;  %s585_s17 = sadd.s32 4294967294, %s855_s15   ;;  %s855_s15 = sphi %s891_s15, %s1170_s15   ;;  %s851_s14 = sphi %s889_s14, %s1169_s14   ;;  %s847_s13 = sphi %s887_s13, %s1168_s13   ;;  %s843_s12 = sphi %s885_s12, %s1167_s12  }
   0xb   : > { %s910_s18 = sadd.s32 1, %s855_s15   ;;  %s29_s19 = sadd.s32 1, %s851_s14 }
   0xc   : > { %s26_s20 = ssub.s32 %s855_s15, %s910_s18  ;;  %p36_p0 = scmp.ne.s32.totalorder %s851_s14, %s847_s13 }
   0xd   : > { %p27_p1 = scmp.eq.s32.totalorder %s26_s20, 0  ;;  %p37_p2 = scmp.eq.s32.totalorder %s855_s15, 0 }
   0xe   : > { %p42_p3 = scmp.ne.s32.totalorder %s847_s13, %s843_s12  ;;  %p43_p4 = scmp.eq.s32.totalorder %s906_s16, 0 }
   0xf   : > { %s922_s21 = scalar_select %p27_p1, %s851_s14, %s29_s19  }
  0x10   : > { %p38_p5 = por %p37_p2, %p36_p0  ;;  %p924_p6 = por %p43_p4, %p42_p3 }
  0x11   : > { %p118_p7 = scmp.eq.s32.totalorder %s906_s16, 1  ;;  %p124_p8 = scmp.eq.s32.totalorder %s585_s17, 1 }
  0x12   : > { %s1151_s22 = scalar_select %p924_p6, 1, 0 }
  0x13   : > { %p657_p10 = scmp.lt.s32.totalorder %s855_s15, 2  ;;  %p931_p11 = por %p118_p7, %p36_p0 }
  0x14   : > { %p935_p12 = por %p124_p8, %p42_p3  ;;  %s144_s25 = sand.u32 1, %s851_s14  }
  0x15   : > { %s1152_s23 = scalar_select %p931_p11, 1, 0 }
  0x16   : > { %s1153_s24 = scalar_select %p935_p12, 1, 0 }
  0x17   : > { %s941_s26 = sshll.u32 %s855_s15, 8  ;;  %s945_s27 = sshll.u32 %s144_s25, 4 }
  0x18   : > { %p947_p13 = pnand %p657_p10, %p38_p5  ;;  %s165_s29 = sand.u32 1, %s855_s15  }
  0x19   : > { %s1155_s1 = sld [smem:[#allocation13_spill]]  ;;  %s169_s6 = scalar_lea.vmem [#allocation5], %s945_s27 }
  0x1a   : > { %s176_s7 = sshll.u32 %s169_s6, 4  ;;  %s962_s8 = scalar_lea.sflag [#allocation6], %s165_s29  ;;  %s959_s7 = int_to_ptr.vmem [resolvable:$true] %s176_s7 }
  0x1b   : > { %p968_p2 = pneg %p947_p13 }
  0x1f   : > { %s956_s5 = scalar_lea.hbm %s1155_s1, %s941_s26  ;;  %s708_s19 = scalar_lea.hbm %s1155_s1, 512 }
  0x20   : > { %s703_s9 = scalar_lea.hbm %s956_s5, 256  ;;  %p709_p5 = scmp.lt.s32.totalorder %s956_s5, %s1155_s1 }
  0x21   : > { %p704_p1 = scmp.ne.s32.totalorder %s956_s5, %s703_s9  ;;  %p710_p7 = scmp.lt.s32.totalorder %s708_s19, %s703_s9 }
  0x23   : > { %p706_p3 = pnand %p968_p2, %p704_p1  ;;  %p711_p8 = por %p710_p7, %p709_p5 }
  0x25   : > { %p707_p4 = pneg %p706_p3 }
  0x27   : > { %p712_p10 = pnand %p711_p8, %p707_p4 }
  0x29   : > { %715 = shalt.err (!%p712_p10)
}
  0x2a   : > { %s716_s29 = scalar_lea.vmem %s959_s7, 256  ;;  %s857_s4 = smov [#allocation5]  }
  0x2b   : > { %p717_p9 = scmp.ne.s32.totalorder %s959_s7, %s716_s29  ;;  %s721_s6 = sshll.u32 %s857_s4, 4  ;;  %s722_s6 = int_to_ptr.vmem [resolvable:$false] %s721_s6 }
  0x2c   : > { %s723_s11 = scalar_lea.vmem %s722_s6, 512  ;;  %p724_p0 = scmp.lt.s32.totalorder %s959_s7, %s722_s6 }
  0x2d   : > { %p719_p1 = pnand %p717_p9, %p968_p2  ;;  %p725_p12 = scmp.lt.s32.totalorder %s723_s11, %s716_s29 }
  0x2f   : > { %p720_p3 = pneg %p719_p1  ;;  %p726_p11 = por %p725_p12, %p724_p0 }
  0x31   : > { %p727_p6 = pnand %p726_p11, %p720_p3 }
  0x33   : > { %730 = shalt.err (!%p727_p6)
}
  0x34   : > { %s1145_s9 = smov 128   ;;  %s1147_s17 = smov 8  }
  0x35   : > { %649 = dma.hbm_to_vmem [thread:$0]  (!%p947_p13), %s956_s5, 256, %s959_s7, %s962_s8, %s1145_s9, %s1145_s9, %s1147_s17  }
  0x36   : > { %p205_p9 = scmp.lt.s32.totalorder %s855_s15, 3  ;;  %s1157_s0 = sld [smem:[#allocation12_spill]] }
  0x37   : > { %p1158_p6 = scmp.ge.s32.totalorder %s855_s15, 1  ;;  %s148_s4 = scalar_lea.vmem [#allocation2], %s945_s27 }
  0x38   : > { %s155_s6 = sshll.u32 %s148_s4, 4  ;;  %s145_s5 = scalar_lea.sflag [#allocation3], %s144_s25  ;;  %s1008_s6 = int_to_ptr.vmem [resolvable:$true] %s155_s6 }
  0x39   : > { %p1003_p11 = pnand %p1158_p6, %p205_p9 }
  0x3b   : > { %s1159_s29 = scalar_select %p1003_p11, 1, 0 }
  0x3c   : > { %s999_s30 = scalar_lea.hbm %s1157_s0, %s941_s26  ;;  %s736_s20 = scalar_lea.hbm %s1157_s0, 512 }
  0x3d   : > { %s731_s7 = scalar_lea.hbm %s999_s30, 256  ;;  %p737_p5 = scmp.lt.s32.totalorder %s999_s30, %s1157_s0 }
  0x3e   : > { %p732_p12 = scmp.ne.s32.totalorder %s999_s30, %s731_s7  ;;  %p738_p7 = scmp.lt.s32.totalorder %s736_s20, %s731_s7 }
  0x40   : > { %p734_p0 = pnand %p732_p12, %p968_p2  ;;  %p739_p8 = por %p738_p7, %p737_p5 }
  0x42   : > { %p735_p4 = pneg %p734_p0 }
  0x44   : > { %p740_p10 = pnand %p739_p8, %p735_p4 }
  0x46   : > { %743 = shalt.err (!%p740_p10)
}
  0x47   : > { %s744_s25 = scalar_lea.vmem %s1008_s6, 256  ;;  %s860_s4 = smov [#allocation2]  }
  0x48   : > { %p745_p1 = scmp.ne.s32.totalorder %s1008_s6, %s744_s25  ;;  %s749_s11 = sshll.u32 %s860_s4, 4  ;;  %s750_s11 = int_to_ptr.vmem [resolvable:$false] %s749_s11 }
  0x49   : > { %s751_s19 = scalar_lea.vmem %s750_s11, 512  ;;  %p752_p6 = scmp.lt.s32.totalorder %s1008_s6, %s750_s11 }
  0x4a   : > { %p747_p3 = pnand %p745_p1, %p968_p2  ;;  %p753_p12 = scmp.lt.s32.totalorder %s751_s19, %s744_s25 }
  0x4c   : > { %p748_p9 = pneg %p747_p3  ;;  %p754_p0 = por %p753_p12, %p752_p6 }
  0x4e   : > { %p755_p11 = pnand %p754_p0, %p748_p9 }
  0x50   : > { %758 = shalt.err (!%p755_p11)
}
  0x51   : > { %s1160_s9 = smov 8   ;;  %s1161_s17 = smov 128  }
  0x52   : > { %646 = dma.hbm_to_vmem [thread:$0]  (!%p947_p13), %s999_s30, 256, %s1008_s6, %s145_s5, %s1161_s17, %s1161_s17, %s1160_s9  }
  0x53   : > { %s1039_s4 = scalar_lea.hbm %s1141_s2, %s941_s26  ;;  %s190_s25 = scalar_lea.vmem [#allocation7], %s945_s27 }
  0x54   : > { %s197_s11 = sshll.u32 %s190_s25, 4  ;;  %s759_s19 = scalar_lea.hbm %s1039_s4, 256  ;;  %s198_s11 = int_to_ptr.vmem [resolvable:$true] %s197_s11 }
  0x55   : > { %p760_p11 = scmp.ne.s32.totalorder %s1039_s4, %s759_s19  ;;  %s764_s30 = scalar_lea.hbm %s1141_s2, 512 }
  0x56   : > { %p765_p7 = scmp.lt.s32.totalorder %s1039_s4, %s1141_s2  ;;  %p766_p8 = scmp.lt.s32.totalorder %s764_s30, %s759_s19 }
  0x57   : > { %p762_p4 = pnand %p760_p11, %p968_p2 }
  0x58   : > { %p767_p10 = por %p766_p8, %p765_p7 }
  0x59   : > { %p763_p5 = pneg %p762_p4 }
  0x5b   : > { %p768_p1 = pnand %p767_p10, %p763_p5 }
  0x5d   : > { %771 = shalt.err (!%p768_p1)
}
  0x5e   : > { %s772_s26 = scalar_lea.vmem %s198_s11, 256  ;;  %s861_s27 = smov [#allocation7]  }
  0x5f   : > { %p773_p3 = scmp.ne.s32.totalorder %s198_s11, %s772_s26  ;;  %s777_s7 = sshll.u32 %s861_s27, 4  ;;  %s778_s7 = int_to_ptr.vmem [resolvable:$false] %s777_s7 }
  0x60   : > { %s779_s20 = scalar_lea.vmem %s778_s7, 512  ;;  %p780_p12 = scmp.lt.s32.totalorder %s198_s11, %s778_s7 }
  0x61   : > { %p775_p9 = pnand %p773_p3, %p968_p2  ;;  %p781_p0 = scmp.lt.s32.totalorder %s779_s20, %s772_s26 }
  0x63   : > { %p776_p6 = pneg %p775_p9  ;;  %p782_p11 = por %p781_p0, %p780_p12 }
  0x65   : > { %p783_p4 = pnand %p782_p11, %p776_p6 }
  0x67   : > { %786 = shalt.err (!%p783_p4)
}
  0x68   : > { %652 = dma.hbm_to_vmem [thread:$0]  (!%p947_p13), %s1039_s4, 256, %s198_s11, %s962_s8, %s1161_s17, %s1161_s17, %s1160_s9  }
  0x69   : > { %p1162_p2 = scmp.ne.s32.totalorder %s1159_s29, 0 }
  0x6a   : > { %s1065_s0 = sand.u32 (!%p1162_p2), 1, %s847_s13   ;;  %p1163_p5 = scmp.ne.s32.totalorder (!%p1162_p2), %s1151_s22, 0 }
  0x6b   : > { %209 = sbr.rel (%p1162_p2) target bundleno = 847 (0x34f), region = 32  ;;  %s1068_s1 = sshll.u32 (!%p1162_p2), %s1065_s0, 4 }
  0x6c   : > { %s212_s10 = scalar_lea.sflag (!%p1162_p2), [#allocation3], %s1065_s0  ;;  %s215_s28 = scalar_lea.vmem (!%p1162_p2), [#allocation2], %s1068_s1 }
  0x70   : > { %830 = dma.done.wait (%p1163_p5), %s212_s10, 256  }
  0x71   : > { %832 = vsyncadd (%p1163_p5), %s212_s10, 4294967040  ;;  %s220_s8 = sand.u32 1, %s906_s16   ;;  %s224_s9 = scalar_lea.vmem [#allocation5], %s1068_s1 }
  0x72   : > { %s221_s29 = scalar_lea.sflag [#allocation6], %s220_s8 }
  0x73   : > { %834 = dma.done.wait (%p1163_p5), %s221_s29, 512  }
  0x74   : > { %836 = vsyncadd (%p1163_p5), %s221_s29, 4294966784  ;;  %v269_v0 = vld [vmem:[%s224_s9 + $0x8] sm:$0xff]  ;;  %v268_v1 = vld [vmem:[%s224_s9] sm:$0xff]  ;;  %vm349_vm0 = vcmask 130048   ;;  %s233_s22 = scalar_lea.vmem [#allocation7], %s1068_s1  ;;  %s265_s17 = scalar_lea.vmem [#allocation8], %s1068_s1 }
  0x75   : > { %v266_v2 = vld [vmem:[%s215_s28] sm:$0xff]  ;;  %621 = vmatprep.subr.mxu0 %v269_v0  ;;  %v267_v3 = vld [vmem:[%s215_s28 + $0x8] sm:$0xff]  ;;  %s469_s4 = sshll.u32 %s265_s17, 4  ;;  %s612_s25 = sshll.u32 %s906_s16, 8  ;;  %s1091_s4 = int_to_ptr.vmem [resolvable:$true] %s469_s4 }
  0x76   : > { %625 = vmatprep.mubr.f32.mxu0 %v266_v2  ;;  %622 = vmatpush3.xpose.msra.mxu0 %v269_v0  ;;  %v271_v20 = vld [vmem:[%s233_s22 + $0x8] sm:$0xff]  ;;  %v270_v21 = vld [vmem:[%s233_s22] sm:$0xff]  ;;  %s1096_s30 = scalar_lea.hbm %s1142_s3, %s612_s25  ;;  %s456_s6 = scalar_lea.sflag [#allocation4], %s1065_s0 }
  0x77   : > { %623 = vmatprep.subr.mxu0 %v268_v1  ;;  %628 = vmatprep.subr.mxu1 %v271_v20  ;;  %s787_s5 = scalar_lea.vmem %s1091_s4, 256  ;;  %p1164_p7 = scmp.ne.s32.totalorder %s1152_s23, 0 }
  0x78   : > { %629 = vmatpush3.msra.mxu1 %v271_v20  ;;  %p788_p13 = scmp.ne.s32.totalorder %s1091_s4, %s787_s5  ;;  %s862_s16 = smov [#allocation8]  }
  0x79   : > { %630 = vmatprep.subr.mxu1 %v270_v21  ;;  %s791_s26 = sshll.u32 %s862_s16, 4  ;;  %s792_s26 = int_to_ptr.vmem [resolvable:$false] %s791_s26 }
  0x7a   : > { %624 = vmatpush3.xpose.msra.mxu0 %v268_v1  ;;  %631 = vmatpush3.msra.mxu1 %v270_v21  ;;  %p789_p8 = pnand %p788_p13, %p1164_p7  ;;  %s793_s27 = scalar_lea.vmem %s792_s26, 512 }
  0x7b   : > { %p794_p1 = scmp.lt.s32.totalorder %s1091_s4, %s792_s26  ;;  %p795_p3 = scmp.lt.s32.totalorder %s793_s27, %s787_s5 }
  0x7c   : > { %p790_p10 = pneg %p789_p8 }
  0x7d   : > { %626 = vmatmul.mubr.f32.vlgmr.msra.gmra.mxu0 %v267_v3  ;;  %p796_p9 = por %p795_p3, %p794_p1 }
  0x7f   : > { %p797_p6 = pnand %p796_p9, %p790_p10 }
 0x13d   : > { %v627_v4 = vpop.f32.mrf.mxu0 }
 0x13e   : > { %v348_v7 = vmul.f32 0.33333334, %v627_v4 }
 0x13f   : > { %v338_v5 = vpop.f32.mrf.mxu0 }
 0x140   : > { %v347_v6 = vmul.f32 0.33333334, %v338_v5  ;;  %v353_v9 = vsel %vm349_vm0, %v348_v7, -inf }
 0x142   : > { %v350_v8 = vsel %vm349_vm0, %v347_v6, -inf }
 0x143   : > { %351 = vmax.xlane.f32.xlu0 %v350_v8 }
 0x147   : > { %354 = vmax.xlane.f32.xlu0 %v353_v9 }
 0x1cc   : > { %v352_v10 = vpop.xlane.xlu0 %351 }
 0x1cd   : > { %v356_v11 = vsub.f32 %v347_v6, %v352_v10 }
 0x1cf   : > { %v358_v12 = vmul.f32 1.442695, %v356_v11 }
 0x1d0   : > { %v355_v13 = vpop.xlane.xlu0 %354 }
 0x1d1   : > { %695 = vpow2.f32 %v358_v12  ;;  %v357_v14 = vsub.f32 %v348_v7, %v355_v13 }
 0x1d3   : > { %v360_v15 = vmul.f32 1.442695, %v357_v14 }
 0x1d5   : > { %697 = vpow2.f32 %v360_v15 }
 0x1de   : > { %v696_v16 = vpop.eup %695 }
 0x1df   : > { %v362_v17 = vsel %vm349_vm0, %v696_v16, 0.0 }
 0x1e0   : > { %363 = vadd.xlane.f32.xlu1 %v362_v17 }
 0x1e2   : > { %v698_v18 = vpop.eup %697 }
 0x1e3   : > { %v365_v19 = vsel %vm349_vm0, %v698_v18, 0.0 }
 0x1e4   : > { %366 = vadd.xlane.f32.xlu1 %v365_v19 }
 0x269   : > { %v364_v22 = vpop.xlane.xlu1 %363 }
 0x26a   : > { %699 = vrcp.f32 %v364_v22 }
 0x26d   : > { %v367_v23 = vpop.xlane.xlu1 %366 }
 0x26e   : > { %701 = vrcp.f32 %v367_v23 }
 0x277   : > { %v700_v24 = vpop.eup %699 }
 0x278   : > { %v370_v25 = vmul.f32 %v700_v24, %v696_v16 }
 0x27a   : > { %632 = vmatprep.mubr.msk.f32.mxu1 %vm349_vm0, %v370_v25 }
 0x27b   : > { %v702_v26 = vpop.eup %701 }
 0x27c   : > { %v371_v27 = vmul.f32 %v702_v26, %v698_v18 }
 0x27e   : > { %633 = vmatmul.mubr.msk.f32.vlgmr.msra.gmra.mxu1 %vm349_vm0, %v371_v27 }
 0x33e   : > { %v634_v28 = vpop.f32.mrf.mxu1 }
 0x33f   : > { %454 = vst [vmem:[%s265_s17 + $0x8] sm:$0xff] %v634_v28 }
 0x340   : > { %v444_v29 = vpop.f32.mrf.mxu1 }
 0x341   : > { %453 = vst [vmem:[%s265_s17] sm:$0xff] %v444_v29 }
 0x342   : > { %800 = shalt.err (!%p797_p6)
}
 0x343   : > { %s801_s7 = scalar_lea.hbm %s1096_s30, 256  ;;  %s805_s10 = scalar_lea.hbm %s1142_s3, 512 }
 0x344   : > { %p802_p12 = scmp.ne.s32.totalorder %s1096_s30, %s801_s7  ;;  %p806_p4 = scmp.lt.s32.totalorder %s1096_s30, %s1142_s3 }
 0x345   : > { %p807_p2 = scmp.lt.s32.totalorder %s805_s10, %s801_s7 }
 0x346   : > { %p803_p0 = pnand %p802_p12, %p1164_p7 }
 0x347   : > { %p808_p5 = por %p807_p2, %p806_p4 }
 0x348   : > { %p804_p11 = pneg %p803_p0 }
 0x34a   : > { %p809_p13 = pnand %p808_p5, %p804_p11 }
 0x34c   : > { %812 = shalt.err (!%p809_p13)
}
 0x34d   : > { %s863_s29 = smov 128   ;;  %s864_s9 = smov 8  }
 0x34e   : > { %641 = dma.vmem_to_hbm [thread:$0]  (%p1164_p7), %s1091_s4, 256, %s1096_s30, %s456_s6, %s863_s29, %s863_s29, %s864_s9  }
 0x34f PF: > { %s484_s22 = sand.u32 1, %s843_s12   ;;  %p1165_p8 = scmp.ne.s32.totalorder %s1153_s24, 0 }
 0x350   : > { %p1166_p10 = scmp.ge.s32.totalorder %s855_s15, 2  ;;  %s485_s17 = scalar_lea.sflag [#allocation4], %s484_s22 }
 0x352   : > { %p654_p1 = pnand %p1166_p10, %p1165_p8 }
 0x354   : > { %p655_p3 = pneg %p654_p1 }
 0x356   : > { %838 = dma.done.wait (%p655_p3), %s485_s17, 256  }
 0x357   : > { %840 = vsyncadd (%p655_p3), %s485_s17, 4294967040  ;;  %p19_p9 = scmp.ge.s32.totalorder %s910_s18, 4   ;;  %s1167_s12 = smov %s847_s13 }
 0x358   : > { %s1168_s13 = smov %s851_s14  ;;  %s1169_s14 = smov %s922_s21 }
 0x359   : > { %s1170_s15 = smov %s910_s18  ;;  %21 = sbr.rel (!%p19_p9) target bundleno = 10 (0xa), region = 101 }
 0x35e   :  { %490 = vsyncpa [#allocation3], 1 }
 0x35f   :  { %492 = vsyncpa [#allocation3 + $0x1], 1 }
 0x360   :  { %493 = vsyncpa [#allocation6], 1 }
 0x361   :  { %495 = vsyncpa [#allocation6 + $0x1], 1 }
 0x362   :  { %496 = vsyncpa [#allocation4], 1 }
 0x363   :  { %498 = vsyncpa [#allocation4 + $0x1], 1 }

</bundles_post_ra>
